<compile_context>
chip_gen: v7x
topology: tpu7x:2x2x1
jax: 0.10.0
libtpu: 0.0.40
codegen_flags: <defaults>
</compile_context>

<pallas_src>
import functools
import math

import jax
import jax.numpy as jnp
from jax.experimental import pallas as pl
from jax.experimental.pallas import tpu as pltpu

EPS = 1e-5  # nn.LayerNorm default


def _merge_ln_linear_kernel(x_ref, w_even_ref, w_odd_ref, b_ref, o_ref):
    """Fused 2x2 patch merge + LayerNorm(4C) + Linear(4C -> 2C, no bias).

    x_ref:      (tr, 2, Wh, 2C) one contiguous slab of `tr` 2-image-row strips;
                parity 0 holds [TL | TR], parity 1 holds [BL | BR].
    w_even_ref: (2C, N) gamma-folded weight rows for the [TL | TR] features.
    w_odd_ref:  (2C, N) gamma-folded weight rows for the [BL | BR] features.
    b_ref:      (1, N)  beta @ W^T.
    o_ref:      (tr*Wh, N)
    """
    tr, _, wh, c2 = x_ref.shape
    rows = tr * wh

    # f32 for LayerNorm statistics (v5e has no bf16 VALU/EUP; the kernel is
    # HBM-bound so the upcast is free).
    e = x_ref[:, 0].astype(jnp.float32)   # (tr, Wh, 2C) = [TL | TR]
    o = x_ref[:, 1].astype(jnp.float32)   # (tr, Wh, 2C) = [BL | BR]

    inv_n = 1.0 / (2 * c2)                # 1 / (4*C) features per output row
    mean = (jnp.sum(e, axis=-1, keepdims=True)
            + jnp.sum(o, axis=-1, keepdims=True)) * inv_n
    ec = e - mean
    oc = o - mean
    var = (jnp.sum(ec * ec, axis=-1, keepdims=True)
           + jnp.sum(oc * oc, axis=-1, keepdims=True)) * inv_n
    inv = jax.lax.rsqrt(var + EPS)

    # Cast to the matmul operand dtype, then flatten rows for 2-D MXU matmuls.
    # TODO(synk): when Wh % 8 != 0 (Swin's 28/14/7 widths) this reshape may
    # relayout across sublanes; a rank-3 dot_general would avoid it but is not
    # portably supported by the Mosaic lowering, so the 2-D matmul is kept.
    ye = (ec * inv).astype(w_even_ref.dtype).reshape(rows, c2)
    yo = (oc * inv).astype(w_odd_ref.dtype).reshape(rows, c2)

    acc = jnp.dot(ye, w_even_ref[...], preferred_element_type=jnp.float32)
    acc = acc + jnp.dot(yo, w_odd_ref[...], preferred_element_type=jnp.float32)
    acc = acc + b_ref[...]                # folded LayerNorm bias (beta @ W^T)
    o_ref[...] = acc.astype(o_ref.dtype)


def _vmem_capacity_bytes():
    try:
        return int(pltpu.get_tpu_info().vmem_capacity_bytes)
    except Exception:
        return 64 * 1024 * 1024           # conservative (v7x-sized) fallback


def _pick_row_tile(R, Wh, c2_in, n_out, in_itemsize, out_itemsize, mm_itemsize,
                   vmem_capacity):
    """Choose how many 2-image-row strips (tr) each grid step processes.

    Generation aware: on v7x (64 MiB VMEM, 2 TensorCores) keep the footprint
    ~36 MiB and prefer an even, balanced number of grid steps; on v5e/v6e
    (128 MiB, 1 TC) use bigger tiles (~2k output rows / step).
    """
    small_vmem = vmem_capacity <= 80 * 1024 * 1024        # v7x
    budget = (36 if small_vmem else 72) * 1024 * 1024
    target_rows = 1024 if small_vmem else 2048
    min_rows_per_step = 256 if small_vmem else 512

    # Grid-invariant blocks (weights + bias), double-buffered by the pipeline.
    fixed = 2 * (2 * c2_in * n_out * mm_itemsize + n_out * 4)
    # Per output row: input slab (2*2C elems, double-buffered), output block
    # (double-buffered), plus in-kernel f32 / matmul-dtype temporaries.
    per_row = (2 * 2 * c2_in * in_itemsize
               + 2 * n_out * out_itemsize
               + 5 * c2_in * 4 + 2 * c2_in * mm_itemsize
               + 2 * n_out * 4)
    rows_cap = max(Wh, (budget - fixed) // per_row)
    tr_cap = max(1, rows_cap // Wh)
    tr_target = max(1, -(-target_rows // Wh))
    tr = max(1, min(R, tr_cap, tr_target))

    # With more than one grid step the output block's sublane dim (tr*Wh) must
    # be a multiple of 8; tr must therefore be a multiple of q.
    q = 8 // math.gcd(Wh, 8)

    def _align(t):
        t = min(t, R)
        if t >= R:
            return R
        return max(q, (t // q) * q)

    def _steps(t):
        return -(-R // t)

    tr = _align(tr)

    # Prefer an even, balanced step count (v7x: 2 TensorCores on the "parallel"
    # axis; 1 step idles a core, odd counts leave a 2:1 imbalance), but only
    # while each step keeps at least min_rows_per_step output rows.
    if _steps(tr) % 2 == 1:
        cand = tr
        while cand > q:
            cand = _align(cand - q)
            if cand * Wh < min_rows_per_step:
                break
            if _steps(cand) % 2 == 0:
                tr = cand
                break

    est = fixed + tr * Wh * per_row
    return tr, est


def _fused_patch_merge(xr, w_even, w_odd, bias, *, R, Wh, c2_in, n_out, out_dtype):
    """xr: (R, 2, Wh, 2C) contiguous view of the feature map -> (R*Wh, 2C_out)."""
    vmem_cap = _vmem_capacity_bytes()
    tr, est = _pick_row_tile(R, Wh, c2_in, n_out,
                             xr.dtype.itemsize,
                             jnp.dtype(out_dtype).itemsize,
                             w_even.dtype.itemsize,
                             vmem_cap)
    M = R * Wh
    grid = (pl.cdiv(R, tr),)
    hard_cap = (48 if vmem_cap <= 80 * 1024 * 1024 else 104) * 1024 * 1024
    vmem_limit = int(min(hard_cap, max(32 * 1024 * 1024, 2 * est)))

    return pl.pallas_call(
        _merge_ln_linear_kernel,
        out_shape=jax.ShapeDtypeStruct((M, n_out), out_dtype),
        grid_spec=pltpu.PrefetchScalarGridSpec(
            num_scalar_prefetch=0,
            grid=grid,
            in_specs=[
                # One contiguous (tr, 2, Wh, 2C) slab per step: a single
                # sequential DMA instead of 2*tr strided parity descriptors.
                pl.BlockSpec((tr, 2, Wh, c2_in), lambda i: (i, 0, 0, 0)),
                # Grid-invariant operands (constant index_map => not re-DMA'd
                # between steps).
                # TODO(synk): pipeline_mode=pl.Buffered(1) would single-buffer
                # these (a few MiB at large C on v7x); left at the default for
                # portability across Pallas versions.
                pl.BlockSpec((c2_in, n_out), lambda i: (0, 0)),
                pl.BlockSpec((c2_in, n_out), lambda i: (0, 0)),
                pl.BlockSpec((1, n_out), lambda i: (0, 0)),
            ],
            out_specs=pl.BlockSpec((tr * Wh, n_out), lambda i: (i, 0)),
        ),
        compiler_params=pltpu.CompilerParams(
            dimension_semantics=("parallel",),
            vmem_limit_bytes=vmem_limit,
        ),
    )(xr, w_even, w_odd, bias)


def patch_merging(x, H, W, params):
    """Forward pass matching PatchMerging.forward(x, H, W).

    x: (B, L, C) with L == H*W.
    params: dict with 'reduction_w' (2C, 4C), 'norm_w' (4C,), 'norm_b' (4C,).
    returns: (B, ceil(H/2)*ceil(W/2), 2C), same dtype as x.
    """
    B, L, C = x.shape
    assert L == H * W, "input feature has wrong size"

    xv = x.reshape(B, H, W, C)
    if (H % 2 == 1) or (W % 2 == 1):
        # Rare odd-size path; same semantics as F.pad(x, (0,0, 0,W%2, 0,H%2)).
        # TODO(synk): this pad is one extra HBM copy on the odd-size path only.
        xv = jnp.pad(xv, ((0, 0), (0, H % 2), (0, W % 2), (0, 0)))
    Hp, Wp = xv.shape[1], xv.shape[2]
    Hh, Wh = Hp // 2, Wp // 2
    R = B * Hh
    c2_in = 2 * C

    # Free (contiguous) reshape: strip r = (b, i) holds image rows 2i and 2i+1;
    # the parity-0 slab is [x(2i,2j) | x(2i,2j+1)] = [TL|TR], parity-1 = [BL|BR].
    xr = xv.reshape(R, 2, Wh, c2_in)

    # Fold LayerNorm's affine into the reduction:
    #   ((x-mean)*inv*gamma + beta) @ W^T
    #     == ((x-mean)*inv) @ (gamma[:,None] * W^T) + beta @ W^T
    w_t = params["reduction_w"].T.astype(jnp.float32)          # (4C, 2C_out)
    gamma = params["norm_w"].astype(jnp.float32)
    beta = params["norm_b"].astype(jnp.float32)
    w_g = gamma[:, None] * w_t
    n_out = w_t.shape[1]

    # MXU operand dtype: keep f32 at small C (demo stays bit-tight vs. the
    # reference); switch to bf16 operands + f32 accumulation at large C so the
    # kernel stays HBM-bound (instead of flipping MXU-bound on v5e/v6e).
    if x.dtype == jnp.bfloat16 or (x.dtype == jnp.float32 and C >= 192):
        mm_dtype = jnp.bfloat16
    else:
        mm_dtype = x.dtype

    # torch.cat order is [TL(0:C), BL(C:2C), TR(2C:3C), BR(3C:4C)]; regroup the
    # weight rows to match the kernel's even ([TL|TR]) / odd ([BL|BR]) slabs.
    w_even = jnp.concatenate([w_g[0:C], w_g[2 * C:3 * C]], axis=0).astype(mm_dtype)
    w_odd = jnp.concatenate([w_g[C:2 * C], w_g[3 * C:4 * C]], axis=0).astype(mm_dtype)
    bias = (beta @ w_t).reshape(1, n_out).astype(jnp.float32)

    out = _fused_patch_merge(xr, w_even, w_odd, bias,
                             R=R, Wh=Wh, c2_in=c2_in, n_out=n_out,
                             out_dtype=x.dtype)
    return out.reshape(B, Hh * Wh, n_out)


def init_params(dim, key):
    (k1,) = jax.random.split(key, 1)
    # nn.Linear default init: U(-1/sqrt(fan_in), 1/sqrt(fan_in)); deterministic here.
    bound = 1.0 / (4 * dim) ** 0.5
    reduction_w = jax.random.uniform(
        k1, (2 * dim, 4 * dim), jnp.float32, minval=-bound, maxval=bound
    )
    norm_w = jnp.ones((4 * dim,), jnp.float32)
    norm_b = jnp.zeros((4 * dim,), jnp.float32)
    return {"reduction_w": reduction_w, "norm_w": norm_w, "norm_b": norm_b}


if __name__ == "__main__":
    key = jax.random.PRNGKey(0)
    kx, kp = jax.random.split(key)

    B, H, W, dim = 2, 16, 16, 32          # L = 256, C = 32 -> 4C = 128, 2C = 64
    x = jax.random.normal(kx, (B, H * W, dim), jnp.float32)
    params = init_params(dim, kp)

    fn = jax.jit(functools.partial(patch_merging, H=H, W=W))
    out = jax.block_until_ready(fn(x, params=params))

    # Reference in plain JAX (same math as the PyTorch module).
    xv = x.reshape(B, H, W, dim)
    x0 = xv[:, 0::2, 0::2, :]
    x1 = xv[:, 1::2, 0::2, :]
    x2 = xv[:, 0::2, 1::2, :]
    x3 = xv[:, 1::2, 1::2, :]
    xc = jnp.concatenate([x0, x1, x2, x3], -1).reshape(B, -1, 4 * dim)
    mean = jnp.mean(xc, -1, keepdims=True)
    var = jnp.mean((xc - mean) ** 2, -1, keepdims=True)
    ref = (xc - mean) / jnp.sqrt(var + EPS) * params["norm_w"] + params["norm_b"]
    ref = ref @ params["reduction_w"].T

    assert out.shape == (B, (H // 2) * (W // 2), 2 * dim), out.shape
    err = float(jnp.max(jnp.abs(out - ref)))
    assert jnp.allclose(out, ref, atol=1e-4, rtol=1e-4), err
    print("KERNEL_OK")
</pallas_src>

<mosaic_0001>
module attributes {stable_mosaic.version = 11 : i64} {
  func.func @_merge_ln_linear_kernel(%arg0: i32, %arg1: memref<16x2x8x64xf32, #tpu.memory_space<vmem>>, %arg2: memref<64x64xf32, #tpu.memory_space<vmem>>, %arg3: memref<64x64xf32, #tpu.memory_space<vmem>>, %arg4: memref<1x64xf32, #tpu.memory_space<vmem>>, %arg5: memref<128x64xf32, #tpu.memory_space<vmem>>) attributes {dimension_semantics = [#tpu.dimension_semantics<parallel>], iteration_bounds = array<i64: 1>, scalar_prefetch = 0 : i64, scratch_operands = 0 : i64, tpu.core_type = #tpu.core_type<tc>, window_params = [{transform_indices = @transform_0, window_bounds = array<i64: 16, 2, 8, 64>}, {pipeline_mode = #tpu.pipeline_mode<synchronous>, transform_indices = @transform_1, window_bounds = array<i64: 64, 64>}, {pipeline_mode = #tpu.pipeline_mode<synchronous>, transform_indices = @transform_2, window_bounds = array<i64: 64, 64>}, {pipeline_mode = #tpu.pipeline_mode<synchronous>, transform_indices = @transform_3, window_bounds = array<i64: 1, 64>}, {transform_indices = @transform_4, window_bounds = array<i64: 128, 64>}]} {
    %c0 = arith.constant 0 : index
    %c0_0 = arith.constant 0 : index
    %c0_1 = arith.constant 0 : index
    %c0_2 = arith.constant 0 : index
    %0 = vector.load %arg1[%c0, %c0_0, %c0_1, %c0_2] : memref<16x2x8x64xf32, #tpu.memory_space<vmem>>, vector<16x1x8x64xf32>
    %1 = vector.shape_cast %0 : vector<16x1x8x64xf32> to vector<16x8x64xf32>
    %c0_3 = arith.constant 0 : index
    %c1 = arith.constant 1 : index
    %c0_4 = arith.constant 0 : index
    %c0_5 = arith.constant 0 : index
    %2 = vector.load %arg1[%c0_3, %c1, %c0_4, %c0_5] : memref<16x2x8x64xf32, #tpu.memory_space<vmem>>, vector<16x1x8x64xf32>
    %3 = vector.shape_cast %2 : vector<16x1x8x64xf32> to vector<16x8x64xf32>
    %cst = arith.constant dense<0.000000e+00> : vector<16x8xf32>
    %4 = vector.multi_reduction <add>, %1, %cst [2] : vector<16x8x64xf32> to vector<16x8xf32>
    %5 = vector.shape_cast %4 : vector<16x8xf32> to vector<16x8x1xf32>
    %cst_6 = arith.constant dense<0.000000e+00> : vector<16x8xf32>
    %6 = vector.multi_reduction <add>, %3, %cst_6 [2] : vector<16x8x64xf32> to vector<16x8xf32>
    %7 = vector.shape_cast %6 : vector<16x8xf32> to vector<16x8x1xf32>
    %8 = arith.addf %5, %7 : vector<16x8x1xf32>
    %cst_7 = arith.constant 7.812500e-03 : f32
    %9 = vector.broadcast %cst_7 : f32 to vector<16x8x1xf32>
    %10 = arith.mulf %8, %9 : vector<16x8x1xf32>
    %11 = vector.broadcast %10 : vector<16x8x1xf32> to vector<16x8x64xf32>
    %12 = arith.subf %1, %11 : vector<16x8x64xf32>
    %13 = vector.broadcast %10 : vector<16x8x1xf32> to vector<16x8x64xf32>
    %14 = arith.subf %3, %13 : vector<16x8x64xf32>
    %15 = arith.mulf %12, %12 : vector<16x8x64xf32>
    %cst_8 = arith.constant dense<0.000000e+00> : vector<16x8xf32>
    %16 = vector.multi_reduction <add>, %15, %cst_8 [2] : vector<16x8x64xf32> to vector<16x8xf32>
    %17 = vector.shape_cast %16 : vector<16x8xf32> to vector<16x8x1xf32>
    %18 = arith.mulf %14, %14 : vector<16x8x64xf32>
    %cst_9 = arith.constant dense<0.000000e+00> : vector<16x8xf32>
    %19 = vector.multi_reduction <add>, %18, %cst_9 [2] : vector<16x8x64xf32> to vector<16x8xf32>
    %20 = vector.shape_cast %19 : vector<16x8xf32> to vector<16x8x1xf32>
    %21 = arith.addf %17, %20 : vector<16x8x1xf32>
    %cst_10 = arith.constant 7.812500e-03 : f32
    %22 = vector.broadcast %cst_10 : f32 to vector<16x8x1xf32>
    %23 = arith.mulf %21, %22 : vector<16x8x1xf32>
    %cst_11 = arith.constant 9.99999974E-6 : f32
    %24 = vector.broadcast %cst_11 : f32 to vector<16x8x1xf32>
    %25 = arith.addf %23, %24 : vector<16x8x1xf32>
    %26 = math.rsqrt %25 : vector<16x8x1xf32>
    %27 = vector.broadcast %26 : vector<16x8x1xf32> to vector<16x8x64xf32>
    %28 = arith.mulf %12, %27 : vector<16x8x64xf32>
    %29 = vector.shape_cast %28 : vector<16x8x64xf32> to vector<128x64xf32>
    %30 = vector.broadcast %26 : vector<16x8x1xf32> to vector<16x8x64xf32>
    %31 = arith.mulf %14, %30 : vector<16x8x64xf32>
    %32 = vector.shape_cast %31 : vector<16x8x64xf32> to vector<128x64xf32>
    %c0_12 = arith.constant 0 : index
    %c0_13 = arith.constant 0 : index
    %33 = vector.load %arg2[%c0_12, %c0_13] : memref<64x64xf32, #tpu.memory_space<vmem>>, vector<64x64xf32>
    %cst_14 = arith.constant dense<0.000000e+00> : vector<128x64xf32>
    %34 = tpu.matmul %29, %33, %cst_14 {dimension_numbers = #tpu.dot_dimension_numbers<[1], [0], [0], [1], [0, 0, 1, 1], [], []>} : vector<128x64xf32>, vector<64x64xf32>, vector<128x64xf32> -> vector<128x64xf32>
    %c0_15 = arith.constant 0 : index
    %c0_16 = arith.constant 0 : index
    %35 = vector.load %arg3[%c0_15, %c0_16] : memref<64x64xf32, #tpu.memory_space<vmem>>, vector<64x64xf32>
    %cst_17 = arith.constant dense<0.000000e+00> : vector<128x64xf32>
    %36 = tpu.matmul %32, %35, %cst_17 {dimension_numbers = #tpu.dot_dimension_numbers<[1], [0], [0], [1], [0, 0, 1, 1], [], []>} : vector<128x64xf32>, vector<64x64xf32>, vector<128x64xf32> -> vector<128x64xf32>
    %37 = arith.addf %34, %36 : vector<128x64xf32>
    %c0_18 = arith.constant 0 : index
    %c0_19 = arith.constant 0 : index
    %38 = vector.load %arg4[%c0_18, %c0_19] : memref<1x64xf32, #tpu.memory_space<vmem>>, vector<1x64xf32>
    %39 = vector.broadcast %38 : vector<1x64xf32> to vector<128x64xf32>
    %40 = arith.addf %37, %39 : vector<128x64xf32>
    %c0_20 = arith.constant 0 : index
    %c0_21 = arith.constant 0 : index
    %41 = vector.load %arg5[%c0_20, %c0_21] : memref<128x64xf32, #tpu.memory_space<vmem>>, vector<128x64xf32>
    tpu.vector_store %arg5[%c0_20, %c0_21], %40 {strides = array<i32>} : memref<128x64xf32, #tpu.memory_space<vmem>>, vector<128x64xf32>,
    return
  }
  func.func @transform_0(%arg0: i32) -> (i32, i32, i32, i32) {
    %c0_i32 = arith.constant 0 : i32
    %c0_i32_0 = arith.constant 0 : i32
    %c0_i32_1 = arith.constant 0 : i32
    %c0_i32_2 = arith.constant 0 : i32
    return %arg0, %c0_i32, %c0_i32_0, %c0_i32_1 : i32, i32, i32, i32
  }
  func.func @transform_1(%arg0: i32) -> (i32, i32) {
    %c0_i32 = arith.constant 0 : i32
    %c0_i32_0 = arith.constant 0 : i32
    %c0_i32_1 = arith.constant 0 : i32
    return %c0_i32, %c0_i32_0 : i32, i32
  }
  func.func @transform_2(%arg0: i32) -> (i32, i32) {
    %c0_i32 = arith.constant 0 : i32
    %c0_i32_0 = arith.constant 0 : i32
    %c0_i32_1 = arith.constant 0 : i32
    return %c0_i32, %c0_i32_0 : i32, i32
  }
  func.func @transform_3(%arg0: i32) -> (i32, i32) {
    %c0_i32 = arith.constant 0 : i32
    %c0_i32_0 = arith.constant 0 : i32
    %c0_i32_1 = arith.constant 0 : i32
    return %c0_i32, %c0_i32_0 : i32, i32
  }
  func.func @transform_4(%arg0: i32) -> (i32, i32) {
    %c0_i32 = arith.constant 0 : i32
    %c0_i32_0 = arith.constant 0 : i32
    return %arg0, %c0_i32 : i32, i32
  }
}

</mosaic_0001>

<bundles_post_ra>
// kernel: patch_merging.1
= control target key start
LH: loop header
LB: loop body
LE: loop exit
PB: predicated region body
PF: predicated region fallthrough
CT: control target
= control target key end

     0   :  { %vm51_vm0 = vcmask 523264   ;;  %s1782_s0 = inlined_call_operand.vmem [shape: f32[16,2,8,64], index: 0, kind: input, shape index: {}]   ;;  %s1783_s1 = inlined_call_operand.vmem [shape: f32[64,64], index: 1, kind: input, shape index: {}]   ;;  %s1784_s2 = inlined_call_operand.vmem [shape: f32[64,64], index: 2, kind: input, shape index: {}]   ;;  %s1785_s3 = inlined_call_operand.vmem [shape: f32[1,64], index: 3, kind: input, shape index: {}]   ;;  %s1786_s4 = inlined_call_operand.hbm [shape: f32[128,64], index: 4, kind: output, shape index: {}]  }
   0x1   :  { %v1208_v0 = vld [vmem:[%s1782_s0 + $0x10] sm:$0xff]  ;;  %v1213_v1 = vld [vmem:[%s1782_s0] sm:$0xff]  ;;  %v1218_v2 = vld [vmem:[%s1782_s0 + $0x18] sm:$0xff] }
   0x2   :  { %v55_v3 = vsel %vm51_vm0, %v1208_v0, 0.0  ;;  %v52_v4 = vsel %vm51_vm0, %v1213_v1, 0.0  ;;  %v1227_v5 = vld [vmem:[%s1782_s0 + $0x8] sm:$0xff]  ;;  %v103_v6 = vsel %vm51_vm0, %v1218_v2, 0.0  ;;  %v1241_v9 = vld [vmem:[%s1782_s0 + $0x20] sm:$0xff]  ;;  %v1250_v12 = vld [vmem:[%s1782_s0 + $0x38] sm:$0xff] }
   0x3   :  { %56 = vadd.xlane.f32.xlu1 %v55_v3  ;;  %53 = vadd.xlane.f32.xlu0 %v52_v4  ;;  %v100_v7 = vsel %vm51_vm0, %v1227_v5, 0.0  ;;  %v1236_v8 = vld [vmem:[%s1782_s0 + $0x28] sm:$0xff]  ;;  %v58_v11 = vsel %vm51_vm0, %v1241_v9, 0.0  ;;  %v1255_v13 = vld [vmem:[%s1782_s0 + $0x30] sm:$0xff]  ;;  %v109_v14 = vsel %vm51_vm0, %v1250_v12, 0.0 }
   0x4   :  { %v106_v10 = vsel %vm51_vm0, %v1236_v8, 0.0  ;;  %v61_v15 = vsel %vm51_vm0, %v1255_v13, 0.0 }
   0x7   :  { %104 = vadd.xlane.f32.xlu1 %v103_v6  ;;  %101 = vadd.xlane.f32.xlu0 %v100_v7 }
   0xb   :  { %107 = vadd.xlane.f32.xlu1 %v106_v10  ;;  %59 = vadd.xlane.f32.xlu0 %v58_v11 }
   0xc   :  { %9 = vsyncpa [#allocation3], 0  ;;  %v1264_v16 = vld [vmem:[%s1782_s0 + $0x48] sm:$0xff]  ;;  %v1269_v17 = vld [vmem:[%s1782_s0 + $0x40] sm:$0xff] }
   0xd   :  { %v112_v18 = vsel %vm51_vm0, %v1264_v16, 0.0  ;;  %v64_v19 = vsel %vm51_vm0, %v1269_v17, 0.0  ;;  %v1278_v20 = vld [vmem:[%s1782_s0 + $0x58] sm:$0xff]  ;;  %v1283_v21 = vld [vmem:[%s1782_s0 + $0x50] sm:$0xff]  ;;  %v1292_v24 = vld [vmem:[%s1782_s0 + $0x68] sm:$0xff] }
   0xe   :  { %v115_v22 = vsel %vm51_vm0, %v1278_v20, 0.0  ;;  %v67_v23 = vsel %vm51_vm0, %v1283_v21, 0.0  ;;  %v1297_v25 = vld [vmem:[%s1782_s0 + $0x60] sm:$0xff]  ;;  %v118_v26 = vsel %vm51_vm0, %v1292_v24, 0.0  ;;  %v1306_v28 = vld [vmem:[%s1782_s0 + $0x78] sm:$0xff]  ;;  %v1311_v29 = vld [vmem:[%s1782_s0 + $0x70] sm:$0xff] }
   0xf   :  { %110 = vadd.xlane.f32.xlu1 %v109_v14  ;;  %62 = vadd.xlane.f32.xlu0 %v61_v15  ;;  %v70_v27 = vsel %vm51_vm0, %v1297_v25, 0.0  ;;  %v121_v30 = vsel %vm51_vm0, %v1306_v28, 0.0  ;;  %v73_v31 = vsel %vm51_vm0, %v1311_v29, 0.0  ;;  %v1320_v32 = vld [vmem:[%s1782_s0 + $0x88] sm:$0xff]  ;;  %v1325_v33 = vld [vmem:[%s1782_s0 + $0x80] sm:$0xff]  ;;  %v1334_v36 = vld [vmem:[%s1782_s0 + $0x98] sm:$0xff] }
  0x10   :  { %v124_v34 = vsel %vm51_vm0, %v1320_v32, 0.0  ;;  %v76_v35 = vsel %vm51_vm0, %v1325_v33, 0.0  ;;  %v1339_v37 = vld [vmem:[%s1782_s0 + $0x90] sm:$0xff]  ;;  %v127_v38 = vsel %vm51_vm0, %v1334_v36, 0.0  ;;  %v1348_v40 = vld [vmem:[%s1782_s0 + $0xa8] sm:$0xff]  ;;  %v1353_v41 = vld [vmem:[%s1782_s0 + $0xa0] sm:$0xff] }
  0x11   :  { %v79_v39 = vsel %vm51_vm0, %v1339_v37, 0.0  ;;  %v130_v42 = vsel %vm51_vm0, %v1348_v40, 0.0  ;;  %v82_v43 = vsel %vm51_vm0, %v1353_v41, 0.0  ;;  %v1362_v44 = vld [vmem:[%s1782_s0 + $0xb8] sm:$0xff]  ;;  %v1367_v45 = vld [vmem:[%s1782_s0 + $0xb0] sm:$0xff]  ;;  %v1376_v48 = vld [vmem:[%s1782_s0 + $0xc8] sm:$0xff] }
  0x12   :  { %v133_v46 = vsel %vm51_vm0, %v1362_v44, 0.0  ;;  %v85_v47 = vsel %vm51_vm0, %v1367_v45, 0.0  ;;  %v1381_v49 = vld [vmem:[%s1782_s0 + $0xc0] sm:$0xff]  ;;  %v136_v50 = vsel %vm51_vm0, %v1376_v48, 0.0  ;;  %v1390_v52 = vld [vmem:[%s1782_s0 + $0xd8] sm:$0xff]  ;;  %v1395_v53 = vld [vmem:[%s1782_s0 + $0xd0] sm:$0xff] }
  0x13   :  { %113 = vadd.xlane.f32.xlu1 %v112_v18  ;;  %65 = vadd.xlane.f32.xlu0 %v64_v19  ;;  %v88_v51 = vsel %vm51_vm0, %v1381_v49, 0.0  ;;  %v139_v54 = vsel %vm51_vm0, %v1390_v52, 0.0  ;;  %v91_v55 = vsel %vm51_vm0, %v1395_v53, 0.0  ;;  %v1404_v56 = vld [vmem:[%s1782_s0 + $0xe8] sm:$0xff]  ;;  %v1409_v57 = vld [vmem:[%s1782_s0 + $0xe0] sm:$0xff]  ;;  %v1418_v60 = vld [vmem:[%s1782_s0 + $0xf8] sm:$0xff] }
  0x14   :  { %v142_v58 = vsel %vm51_vm0, %v1404_v56, 0.0  ;;  %v94_v59 = vsel %vm51_vm0, %v1409_v57, 0.0  ;;  %v1423_v61 = vld [vmem:[%s1782_s0 + $0xf0] sm:$0xff]  ;;  %v145_v62 = vsel %vm51_vm0, %v1418_v60, 0.0 }
  0x15   :  { %v97_v63 = vsel %vm51_vm0, %v1423_v61, 0.0 }
  0x17   :  { %116 = vadd.xlane.f32.xlu1 %v115_v22  ;;  %68 = vadd.xlane.f32.xlu0 %v67_v23 }
  0x1b   :  { %119 = vadd.xlane.f32.xlu1 %v118_v26  ;;  %71 = vadd.xlane.f32.xlu0 %v70_v27 }
  0x1f   :  { %122 = vadd.xlane.f32.xlu1 %v121_v30  ;;  %74 = vadd.xlane.f32.xlu0 %v73_v31 }
  0x23   :  { %125 = vadd.xlane.f32.xlu1 %v124_v34  ;;  %77 = vadd.xlane.f32.xlu0 %v76_v35 }
  0x27   :  { %128 = vadd.xlane.f32.xlu1 %v127_v38  ;;  %80 = vadd.xlane.f32.xlu0 %v79_v39 }
  0x2b   :  { %131 = vadd.xlane.f32.xlu1 %v130_v42  ;;  %83 = vadd.xlane.f32.xlu0 %v82_v43 }
  0x2f   :  { %134 = vadd.xlane.f32.xlu1 %v133_v46  ;;  %86 = vadd.xlane.f32.xlu0 %v85_v47 }
  0x33   :  { %137 = vadd.xlane.f32.xlu1 %v136_v50  ;;  %89 = vadd.xlane.f32.xlu0 %v88_v51 }
  0x37   :  { %140 = vadd.xlane.f32.xlu1 %v139_v54  ;;  %92 = vadd.xlane.f32.xlu0 %v91_v55 }
  0x3b   :  { %143 = vadd.xlane.f32.xlu1 %v142_v58  ;;  %95 = vadd.xlane.f32.xlu0 %v94_v59 }
  0x3f   :  { %146 = vadd.xlane.f32.xlu1 %v145_v62  ;;  %98 = vadd.xlane.f32.xlu0 %v97_v63 }
  0x90   :  { %v57_v3 = vpop.xlane.xlu1 %56  ;;  %v54_v4 = vpop.xlane.xlu0 %53 }
  0x94   :  { %v105_v6 = vpop.xlane.xlu1 %104  ;;  %v102_v7 = vpop.xlane.xlu0 %101 }
  0x95   :  { %v149_v10 = vadd.f32 %v105_v6, %v57_v3  ;;  %v148_v11 = vadd.f32 %v102_v7, %v54_v4 }
  0x97   :  { %v165_v14 = vmul.f32 0.0078125, %v149_v10  ;;  %v164_v15 = vmul.f32 0.0078125, %v148_v11 }
  0x98   :  { %v108_v18 = vpop.xlane.xlu1 %107  ;;  %v60_v19 = vpop.xlane.xlu0 %59 }
  0x99   :  { %v1430_v22 = vsub.f32 %v1208_v0, %v165_v14  ;;  %v1433_v23 = vsub.f32 %v1218_v2, %v165_v14  ;;  %v1436_v26 = vsub.f32 %v1213_v1, %v164_v15  ;;  %v1439_v27 = vsub.f32 %v1227_v5, %v164_v15 }
  0x9a   :  { %v150_v30 = vadd.f32 %v108_v18, %v60_v19 }
  0x9b   :  { %v276_v31 = vmul.f32 %v1439_v27, %v1439_v27  ;;  %v212_v34 = vmul.f32 %v1436_v26, %v1436_v26  ;;  %v277_v2 = vmul.f32 %v1433_v23, %v1433_v23  ;;  %v213_v5 = vmul.f32 %v1430_v22, %v1430_v22 }
  0x9c   :  { %v166_v35 = vmul.f32 0.0078125, %v150_v30  ;;  %v111_v38 = vpop.xlane.xlu1 %110  ;;  %v63_v0 = vpop.xlane.xlu0 %62 }
  0x9d   :  { %v292_v39 = vsel %vm51_vm0, %v276_v31, 0.0  ;;  %v228_v1 = vsel %vm51_vm0, %v212_v34, 0.0  ;;  %v151_v42 = vadd.f32 %v111_v38, %v63_v0  ;;  %v295_v50 = vsel %vm51_vm0, %v277_v2, 0.0 }
  0x9e   :  { %v1452_v43 = vsub.f32 %v1241_v9, %v166_v35  ;;  %v1455_v46 = vsub.f32 %v1236_v8, %v166_v35  ;;  %293 = vadd.xlane.f32.xlu1 %v292_v39  ;;  %229 = vadd.xlane.f32.xlu0 %v228_v1  ;;  %v231_v8 = vsel %vm51_vm0, %v213_v5, 0.0 }
  0x9f   :  { %v167_v47 = vmul.f32 0.0078125, %v151_v42 }
  0xa0   :  { %v114_v51 = vpop.xlane.xlu1 %113  ;;  %v66_v54 = vpop.xlane.xlu0 %65  ;;  %v278_v55 = vmul.f32 %v1455_v46, %v1455_v46  ;;  %v214_v58 = vmul.f32 %v1452_v43, %v1452_v43 }
  0xa1   :  { %v1463_v59 = vsub.f32 %v1255_v13, %v167_v47  ;;  %v1466_v9 = vsub.f32 %v1250_v12, %v167_v47  ;;  %v152_v62 = vadd.f32 %v114_v51, %v66_v54 }
  0xa2   :  { %296 = vadd.xlane.f32.xlu1 %v295_v50  ;;  %232 = vadd.xlane.f32.xlu0 %v231_v8  ;;  %v298_v63 = vsel %vm51_vm0, %v278_v55, 0.0  ;;  %v234_v4 = vsel %vm51_vm0, %v214_v58, 0.0 }
  0xa3   :  { %v168_v3 = vmul.f32 0.0078125, %v152_v62  ;;  %v279_v6 = vmul.f32 %v1466_v9, %v1466_v9  ;;  %v215_v13 = vmul.f32 %v1463_v59, %v1463_v59 }
  0xa4   :  { %v117_v7 = vpop.xlane.xlu1 %116  ;;  %v69_v10 = vpop.xlane.xlu0 %68 }
  0xa5   :  { %v1476_v12 = vsub.f32 %v1269_v17, %v168_v3  ;;  %v1479_v11 = vsub.f32 %v1264_v16, %v168_v3  ;;  %v153_v14 = vadd.f32 %v117_v7, %v69_v10  ;;  %v301_v15 = vsel %vm51_vm0, %v279_v6, 0.0  ;;  %v445_v6 = vld [vmem:[%s1784_s2 + $0x8] sm:$0xff] }
  0xa6   :  { %299 = vadd.xlane.f32.xlu1 %v298_v63  ;;  %235 = vadd.xlane.f32.xlu0 %v234_v4  ;;  %v237_v19 = vsel %vm51_vm0, %v215_v13, 0.0  ;;  %v444_v4 = vld [vmem:[%s1784_s2] sm:$0xff]  ;;  %v437_v10 = vld [vmem:[%s1783_s1 + $0x8] sm:$0xff] }
  0xa7   :  { %v169_v18 = vmul.f32 0.0078125, %v153_v14  ;;  %v280_v30 = vmul.f32 %v1479_v11, %v1479_v11  ;;  %v216_v31 = vmul.f32 %v1476_v12, %v1476_v12  ;;  %v436_v13 = vld [vmem:[%s1783_s1] sm:$0xff]  ;;  %v1070_v7 = vpack.c.bf16 %v445_v6, %v444_v4 }
  0xa8   :  { %v120_v34 = vpop.xlane.xlu1 %119  ;;  %v72_v17 = vpop.xlane.xlu0 %71  ;;  %v440_v4 = vld [vmem:[%s1783_s1 + $0x20] sm:$0xff] }
  0xa9   :  { %v1488_v35 = vsub.f32 %v1283_v21, %v169_v18  ;;  %v1491_v16 = vsub.f32 %v1278_v20, %v169_v18  ;;  %v154_v38 = vadd.f32 %v120_v34, %v72_v17  ;;  %v304_v0 = vsel %vm51_vm0, %v280_v30, 0.0  ;;  %1071 = vmatprep.subr.bf16.mxu1 %v1070_v7 }
  0xaa   :  { %302 = vadd.xlane.f32.xlu1 %v301_v15  ;;  %238 = vadd.xlane.f32.xlu0 %v237_v19  ;;  %v240_v39 = vsel %vm51_vm0, %v216_v31, 0.0  ;;  %v1086_v19 = vpack.c.bf16 %v437_v10, %v436_v13  ;;  %v441_v13 = vld [vmem:[%s1783_s1 + $0x28] sm:$0xff] }
  0xab   :  { %v170_v2 = vmul.f32 0.0078125, %v154_v38  ;;  %v281_v1 = vmul.f32 %v1491_v16, %v1491_v16  ;;  %v217_v42 = vmul.f32 %v1488_v35, %v1488_v35  ;;  %1073 = vmatpush3.bf16.msra.mxu1 %v1070_v7  ;;  %v1094_v10 = vpack.c.bf16 %v441_v13, %v440_v4 }
  0xac   :  { %v123_v5 = vpop.xlane.xlu1 %122  ;;  %v75_v21 = vpop.xlane.xlu0 %74  ;;  %1087 = vmatprep.subr.bf16.mxu0 %v1086_v19 }
  0xad   :  { %v1500_v47 = vsub.f32 %v1297_v25, %v170_v2  ;;  %v1503_v20 = vsub.f32 %v1292_v24, %v170_v2  ;;  %v155_v50 = vadd.f32 %v123_v5, %v75_v21  ;;  %v307_v51 = vsel %vm51_vm0, %v281_v1, 0.0  ;;  %v447_v2 = vld [vmem:[%s1784_s2 + $0x18] sm:$0xff]  ;;  %1089 = vmatpush3.bf16.msra.mxu0 %v1086_v19 }
  0xae   :  { %305 = vadd.xlane.f32.xlu1 %v304_v0  ;;  %241 = vadd.xlane.f32.xlu0 %v240_v39  ;;  %v243_v55 = vsel %vm51_vm0, %v217_v42, 0.0  ;;  %v446_v0 = vld [vmem:[%s1784_s2 + $0x10] sm:$0xff]  ;;  %v439_v42 = vld [vmem:[%s1783_s1 + $0x18] sm:$0xff] }
  0xaf   :  { %v171_v54 = vmul.f32 0.0078125, %v155_v50  ;;  %v282_v58 = vmul.f32 %v1503_v20, %v1503_v20  ;;  %v218_v8 = vmul.f32 %v1500_v47, %v1500_v47  ;;  %v438_v39 = vld [vmem:[%s1783_s1 + $0x10] sm:$0xff]  ;;  %v1074_v1 = vpack.c.bf16 %v447_v2, %v446_v0 }
  0xb0   :  { %v126_v62 = vpop.xlane.xlu1 %125  ;;  %v78_v25 = vpop.xlane.xlu0 %77  ;;  %v442_v0 = vld [vmem:[%s1783_s1 + $0x30] sm:$0xff] }
  0xb1   :  { %v1512_v63 = vsub.f32 %v1311_v29, %v171_v54  ;;  %v1515_v24 = vsub.f32 %v1306_v28, %v171_v54  ;;  %v156_v3 = vadd.f32 %v126_v62, %v78_v25  ;;  %v310_v29 = vsel %vm51_vm0, %v282_v58, 0.0  ;;  %1075 = vmatprep.subr.bf16.mxu1 %v1074_v1  ;;  %v448_v25 = vld [vmem:[%s1784_s2 + $0x20] sm:$0xff] }
  0xb2   :  { %308 = vadd.xlane.f32.xlu1 %v307_v51  ;;  %244 = vadd.xlane.f32.xlu0 %v243_v55  ;;  %v246_v28 = vsel %vm51_vm0, %v218_v8, 0.0  ;;  %v1090_v51 = vpack.c.bf16 %v439_v42, %v438_v39  ;;  %v443_v39 = vld [vmem:[%s1783_s1 + $0x38] sm:$0xff] }
  0xb3   :  { %v172_v14 = vmul.f32 0.0078125, %v156_v3  ;;  %v283_v15 = vmul.f32 %v1515_v24, %v1515_v24  ;;  %v219_v18 = vmul.f32 %v1512_v63, %v1512_v63  ;;  %1077 = vmatpush3.bf16.msra.mxu1 %v1074_v1  ;;  %v449_v3 = vld [vmem:[%s1784_s2 + $0x28] sm:$0xff]  ;;  %v1098_v42 = vpack.c.bf16 %v443_v39, %v442_v0 }
  0xb4   :  { %v129_v30 = vpop.xlane.xlu1 %128  ;;  %v81_v31 = vpop.xlane.xlu0 %80  ;;  %1091 = vmatprep.subr.bf16.mxu0 %v1090_v51  ;;  %v1078_v6 = vpack.c.bf16 %v449_v3, %v448_v25 }
  0xb5   :  { %v1536_v34 = vsub.f32 %v1325_v33, %v172_v14  ;;  %v1539_v17 = vsub.f32 %v1320_v32, %v172_v14  ;;  %v157_v38 = vadd.f32 %v129_v30, %v81_v31  ;;  %v313_v32 = vsel %vm51_vm0, %v283_v15, 0.0  ;;  %1093 = vmatpush3.bf16.msra.mxu0 %v1090_v51  ;;  %v450_v31 = vld [vmem:[%s1784_s2 + $0x30] sm:$0xff] }
  0xb6   :  { %311 = vadd.xlane.f32.xlu1 %v310_v29  ;;  %247 = vadd.xlane.f32.xlu0 %v246_v28  ;;  %v249_v33 = vsel %vm51_vm0, %v219_v18, 0.0 }
  0xb7   :  { %v173_v5 = vmul.f32 0.0078125, %v157_v38  ;;  %v284_v21 = vmul.f32 %v1539_v17, %v1539_v17  ;;  %v220_v50 = vmul.f32 %v1536_v34, %v1536_v34  ;;  %1079 = vmatprep.subr.bf16.mxu1 %v1078_v6  ;;  %1095 = vmatprep.subr.bf16.mxu0 %v1094_v10  ;;  %v451_v38 = vld [vmem:[%s1784_s2 + $0x38] sm:$0xff] }
  0xb8   :  { %v132_v54 = vpop.xlane.xlu1 %131  ;;  %v84_v55 = vpop.xlane.xlu0 %83  ;;  %1081 = vmatpush3.bf16.msra.mxu1 %v1078_v6  ;;  %v1082_v2 = vpack.c.bf16 %v451_v38, %v450_v31 }
  0xb9   :  { %v1560_v58 = vsub.f32 %v1339_v37, %v173_v5  ;;  %v1563_v8 = vsub.f32 %v1334_v36, %v173_v5  ;;  %v158_v62 = vadd.f32 %v132_v54, %v84_v55  ;;  %v316_v36 = vsel %vm51_vm0, %v284_v21, 0.0  ;;  %1097 = vmatpush3.bf16.msra.mxu0 %v1094_v10 }
  0xba   :  { %314 = vadd.xlane.f32.xlu1 %v313_v32  ;;  %250 = vadd.xlane.f32.xlu0 %v249_v33  ;;  %v252_v37 = vsel %vm51_vm0, %v220_v50, 0.0 }
  0xbb   :  { %v174_v29 = vmul.f32 0.0078125, %v158_v62  ;;  %v285_v28 = vmul.f32 %v1563_v8, %v1563_v8  ;;  %v221_v7 = vmul.f32 %v1560_v58, %v1560_v58  ;;  %1083 = vmatprep.subr.bf16.mxu1 %v1082_v2  ;;  %1099 = vmatprep.subr.bf16.mxu0 %v1098_v42 }
  0xbc   :  { %v135_v14 = vpop.xlane.xlu1 %134  ;;  %v87_v15 = vpop.xlane.xlu0 %86  ;;  %1085 = vmatpush3.bf16.msra.mxu1 %v1082_v2 }
  0xbd   :  { %v1584_v18 = vsub.f32 %v1353_v41, %v174_v29  ;;  %v1587_v19 = vsub.f32 %v1348_v40, %v174_v29  ;;  %v159_v30 = vadd.f32 %v135_v14, %v87_v15  ;;  %v319_v40 = vsel %vm51_vm0, %v285_v28, 0.0  ;;  %1101 = vmatpush3.bf16.msra.mxu0 %v1098_v42 }
  0xbe   :  { %317 = vadd.xlane.f32.xlu1 %v316_v36  ;;  %253 = vadd.xlane.f32.xlu0 %v252_v37  ;;  %v255_v41 = vsel %vm51_vm0, %v221_v7, 0.0 }
  0xbf   :  { %v175_v32 = vmul.f32 0.0078125, %v159_v30  ;;  %v286_v33 = vmul.f32 %v1587_v19, %v1587_v19  ;;  %v222_v1 = vmul.f32 %v1584_v18, %v1584_v18 }
  0xc0   :  { %v138_v5 = vpop.xlane.xlu1 %137  ;;  %v90_v21 = vpop.xlane.xlu0 %89 }
  0xc1   :  { %v1608_v50 = vsub.f32 %v1367_v45, %v175_v32  ;;  %v1611_v51 = vsub.f32 %v1362_v44, %v175_v32  ;;  %v160_v54 = vadd.f32 %v138_v5, %v90_v21  ;;  %v322_v55 = vsel %vm51_vm0, %v286_v33, 0.0 }
  0xc2   :  { %320 = vadd.xlane.f32.xlu1 %v319_v40  ;;  %256 = vadd.xlane.f32.xlu0 %v255_v41  ;;  %v258_v25 = vsel %vm51_vm0, %v222_v1, 0.0 }
  0xc3   :  { %v176_v62 = vmul.f32 0.0078125, %v160_v54  ;;  %v287_v3 = vmul.f32 %v1611_v51, %v1611_v51  ;;  %v223_v45 = vmul.f32 %v1608_v50, %v1608_v50 }
  0xc4   :  { %v141_v4 = vpop.xlane.xlu1 %140  ;;  %v93_v44 = vpop.xlane.xlu0 %92 }
  0xc5   :  { %v1620_v36 = vsub.f32 %v1381_v49, %v176_v62  ;;  %v1623_v37 = vsub.f32 %v1376_v48, %v176_v62  ;;  %v161_v6 = vadd.f32 %v141_v4, %v93_v44  ;;  %v325_v13 = vsel %vm51_vm0, %v287_v3, 0.0 }
  0xc6   :  { %323 = vadd.xlane.f32.xlu1 %v322_v55  ;;  %259 = vadd.xlane.f32.xlu0 %v258_v25  ;;  %v261_v28 = vsel %vm51_vm0, %v223_v45, 0.0 }
  0xc7   :  { %v177_v29 = vmul.f32 0.0078125, %v161_v6  ;;  %v288_v7 = vmul.f32 %v1623_v37, %v1623_v37  ;;  %v224_v10 = vmul.f32 %v1620_v36, %v1620_v36 }
  0xc8   :  { %v144_v14 = vpop.xlane.xlu1 %143  ;;  %v96_v49 = vpop.xlane.xlu0 %95 }
  0xc9   :  { %v1632_v15 = vsub.f32 %v1395_v53, %v177_v29  ;;  %v1635_v48 = vsub.f32 %v1390_v52, %v177_v29  ;;  %v162_v30 = vadd.f32 %v144_v14, %v96_v49  ;;  %v328_v31 = vsel %vm51_vm0, %v288_v7, 0.0 }
  0xca   :  { %326 = vadd.xlane.f32.xlu1 %v325_v13  ;;  %262 = vadd.xlane.f32.xlu0 %v261_v28  ;;  %v264_v0 = vsel %vm51_vm0, %v224_v10, 0.0 }
  0xcb   :  { %v178_v38 = vmul.f32 0.0078125, %v162_v30  ;;  %v289_v40 = vmul.f32 %v1635_v48, %v1635_v48  ;;  %v225_v41 = vmul.f32 %v1632_v15, %v1632_v15 }
  0xcc   :  { %v147_v2 = vpop.xlane.xlu1 %146  ;;  %v99_v53 = vpop.xlane.xlu0 %98 }
  0xcd   :  { %v1644_v39 = vsub.f32 %v1409_v57, %v178_v38  ;;  %v1647_v52 = vsub.f32 %v1404_v56, %v178_v38  ;;  %v163_v32 = vadd.f32 %v147_v2, %v99_v53  ;;  %v331_v33 = vsel %vm51_vm0, %v289_v40, 0.0 }
  0xce   :  { %329 = vadd.xlane.f32.xlu1 %v328_v31  ;;  %265 = vadd.xlane.f32.xlu0 %v264_v0  ;;  %v267_v42 = vsel %vm51_vm0, %v225_v41, 0.0 }
  0xcf   :  { %v179_v1 = vmul.f32 0.0078125, %v163_v32  ;;  %v290_v5 = vmul.f32 %v1647_v52, %v1647_v52  ;;  %v226_v21 = vmul.f32 %v1644_v39, %v1644_v39 }
  0xd1   :  { %v1656_v57 = vsub.f32 %v1423_v61, %v179_v1  ;;  %v1659_v56 = vsub.f32 %v1418_v60, %v179_v1  ;;  %v334_v54 = vsel %vm51_vm0, %v290_v5, 0.0  ;;  %v270_v55 = vsel %vm51_vm0, %v226_v21, 0.0 }
  0xd2   :  { %332 = vadd.xlane.f32.xlu1 %v331_v33  ;;  %268 = vadd.xlane.f32.xlu0 %v267_v42 }
  0xd3   :  { %v291_v62 = vmul.f32 %v1659_v56, %v1659_v56  ;;  %v227_v25 = vmul.f32 %v1656_v57, %v1656_v57 }
  0xd5   :  { %v337_v61 = vsel %vm51_vm0, %v291_v62, 0.0  ;;  %v273_v3 = vsel %vm51_vm0, %v227_v25, 0.0 }
  0xd6   :  { %335 = vadd.xlane.f32.xlu1 %v334_v54  ;;  %271 = vadd.xlane.f32.xlu0 %v270_v55 }
  0xda   :  { %338 = vadd.xlane.f32.xlu1 %v337_v61  ;;  %274 = vadd.xlane.f32.xlu0 %v273_v3 }
 0x12b   :  { %v294_v60 = vpop.xlane.xlu1 %293  ;;  %v230_v45 = vpop.xlane.xlu0 %229 }
 0x12c   :  { %v340_v4 = vadd.f32 %v294_v60, %v230_v45 }
 0x12e   :  { %v356_v44 = vmul.f32 0.0078125, %v340_v4 }
 0x12f   :  { %v297_v6 = vpop.xlane.xlu1 %296  ;;  %v233_v13 = vpop.xlane.xlu0 %232 }
 0x130   :  { %v372_v29 = vadd.f32 1e-05, %v356_v44  ;;  %v341_v28 = vadd.f32 %v297_v6, %v233_v13 }
 0x132   :  { %1121 = vrsqrt.f32 %v372_v29  ;;  %v357_v7 = vmul.f32 0.0078125, %v341_v28 }
 0x133   :  { %v300_v10 = vpop.xlane.xlu1 %299  ;;  %v236_v14 = vpop.xlane.xlu0 %235 }
 0x134   :  { %v373_v49 = vadd.f32 1e-05, %v357_v7  ;;  %v342_v30 = vadd.f32 %v300_v10, %v236_v14 }
 0x136   :  { %1123 = vrsqrt.f32 %v373_v49  ;;  %v358_v31 = vmul.f32 0.0078125, %v342_v30 }
 0x137   :  { %v303_v38 = vpop.xlane.xlu1 %302  ;;  %v239_v0 = vpop.xlane.xlu0 %238 }
 0x138   :  { %v374_v40 = vadd.f32 1e-05, %v358_v31  ;;  %v343_v41 = vadd.f32 %v303_v38, %v239_v0 }
 0x13a   :  { %1125 = vrsqrt.f32 %v374_v40  ;;  %v359_v2 = vmul.f32 0.0078125, %v343_v41 }
 0x13b   :  { %v306_v53 = vpop.xlane.xlu1 %305  ;;  %v242_v32 = vpop.xlane.xlu0 %241 }
 0x13c   :  { %v1122_v33 = vpop.eup %1121  ;;  %v375_v1 = vadd.f32 1e-05, %v359_v2  ;;  %v344_v42 = vadd.f32 %v306_v53, %v242_v32 }
 0x13d   :  { %v420_v5 = vmul.f32 %v1122_v33, %v1439_v27  ;;  %v404_v21 = vmul.f32 %v1122_v33, %v1436_v26 }
 0x13e   :  { %1127 = vrsqrt.f32 %v375_v1  ;;  %v360_v54 = vmul.f32 0.0078125, %v344_v42 }
 0x13f   :  { %v309_v55 = vpop.xlane.xlu1 %308  ;;  %1006 = vmatprep.mubr.msk.f32.mxu1 %vm51_vm0, %v420_v5  ;;  %1046 = vmatprep.mubr.msk.f32.mxu0 %vm51_vm0, %v404_v21  ;;  %v245_v62 = vpop.xlane.xlu0 %244 }
 0x140   :  { %v1124_v25 = vpop.eup %1123  ;;  %v376_v61 = vadd.f32 1e-05, %v360_v54  ;;  %v345_v3 = vadd.f32 %v309_v55, %v245_v62 }
 0x141   :  { %v421_v60 = vmul.f32 %v1124_v25, %v1433_v23  ;;  %v405_v45 = vmul.f32 %v1124_v25, %v1430_v22 }
 0x142   :  { %1129 = vrsqrt.f32 %v376_v61  ;;  %v361_v4 = vmul.f32 0.0078125, %v345_v3 }
 0x143   :  { %v312_v27 = vpop.xlane.xlu1 %311  ;;  %1007 = vmatmul.mubr.msk.f32.vlgmr.msra.gmra.mrb[0].mxu1 %vm51_vm0, %v421_v60  ;;  %1047 = vmatmul.mubr.msk.f32.vlgmr.msra.gmra.mrb[0].mxu0 %vm51_vm0, %v405_v45  ;;  %v248_v26 = vpop.xlane.xlu0 %247 }
 0x144   :  { %v1126_v44 = vpop.eup %1125  ;;  %v377_v6 = vadd.f32 1e-05, %v361_v4  ;;  %v346_v13 = vadd.f32 %v312_v27, %v248_v26 }
 0x145   :  { %v422_v29 = vmul.f32 %v1126_v44, %v1455_v46  ;;  %v406_v28 = vmul.f32 %v1126_v44, %v1452_v43 }
 0x146   :  { %1131 = vrsqrt.f32 %v377_v6  ;;  %v362_v7 = vmul.f32 0.0078125, %v346_v13 }
 0x147   :  { %v315_v23 = vpop.xlane.xlu1 %314  ;;  %1009 = vmatprep.mubr.msk.f32.mxu1 %vm51_vm0, %v422_v29  ;;  %1049 = vmatprep.mubr.msk.f32.mxu0 %vm51_vm0, %v406_v28  ;;  %v251_v22 = vpop.xlane.xlu0 %250 }
 0x148   :  { %v1128_v10 = vpop.eup %1127  ;;  %v378_v14 = vadd.f32 1e-05, %v362_v7  ;;  %v347_v49 = vadd.f32 %v315_v23, %v251_v22 }
 0x149   :  { %v423_v30 = vmul.f32 %v1128_v10, %v1466_v9  ;;  %v407_v31 = vmul.f32 %v1128_v10, %v1463_v59 }
 0x14a   :  { %1133 = vrsqrt.f32 %v378_v14  ;;  %v363_v38 = vmul.f32 0.0078125, %v347_v49 }
 0x14b   :  { %v318_v46 = vpop.xlane.xlu1 %317  ;;  %1010 = vmatmul.mubr.msk.f32.gmra.mrb[2].mxu1 %vm51_vm0, %v423_v30  ;;  %1050 = vmatmul.mubr.msk.f32.gmra.mrb[2].mxu0 %vm51_vm0, %v407_v31  ;;  %v254_v43 = vpop.xlane.xlu0 %253 }
 0x14c   :  { %v1130_v0 = vpop.eup %1129  ;;  %v379_v40 = vadd.f32 1e-05, %v363_v38  ;;  %v348_v41 = vadd.f32 %v318_v46, %v254_v43 }
 0x14d   :  { %v424_v2 = vmul.f32 %v1130_v0, %v1479_v11  ;;  %v408_v53 = vmul.f32 %v1130_v0, %v1476_v12 }
 0x14e   :  { %1135 = vrsqrt.f32 %v379_v40  ;;  %v364_v32 = vmul.f32 0.0078125, %v348_v41 }
 0x14f   :  { %v321_v9 = vpop.xlane.xlu1 %320  ;;  %1012 = vmatprep.mubr.msk.f32.mxu1 %vm51_vm0, %v424_v2  ;;  %1052 = vmatprep.mubr.msk.f32.mxu0 %vm51_vm0, %v408_v53  ;;  %v257_v59 = vpop.xlane.xlu0 %256 }
 0x150   :  { %v1132_v33 = vpop.eup %1131  ;;  %v380_v1 = vadd.f32 1e-05, %v364_v32  ;;  %v349_v42 = vadd.f32 %v321_v9, %v257_v59 }
 0x151   :  { %v425_v5 = vmul.f32 %v1132_v33, %v1491_v16  ;;  %v409_v21 = vmul.f32 %v1132_v33, %v1488_v35 }
 0x152   :  { %1137 = vrsqrt.f32 %v380_v1  ;;  %v365_v54 = vmul.f32 0.0078125, %v349_v42 }
 0x153   :  { %v324_v11 = vpop.xlane.xlu1 %323  ;;  %1013 = vmatmul.mubr.msk.f32.gmra.mrb[4].mxu1 %vm51_vm0, %v425_v5  ;;  %1053 = vmatmul.mubr.msk.f32.gmra.mrb[4].mxu0 %vm51_vm0, %v409_v21  ;;  %v260_v12 = vpop.xlane.xlu0 %259 }
 0x154   :  { %v1134_v55 = vpop.eup %1133  ;;  %v381_v62 = vadd.f32 1e-05, %v365_v54  ;;  %v350_v25 = vadd.f32 %v324_v11, %v260_v12 }
 0x155   :  { %v426_v61 = vmul.f32 %v1134_v55, %v1503_v20  ;;  %v410_v3 = vmul.f32 %v1134_v55, %v1500_v47 }
 0x156   :  { %1139 = vrsqrt.f32 %v381_v62  ;;  %v366_v60 = vmul.f32 0.0078125, %v350_v25 }
 0x157   :  { %v327_v16 = vpop.xlane.xlu1 %326  ;;  %1015 = vmatprep.mubr.msk.f32.mxu1 %vm51_vm0, %v426_v61  ;;  %1055 = vmatprep.mubr.msk.f32.mxu0 %vm51_vm0, %v410_v3  ;;  %v263_v35 = vpop.xlane.xlu0 %262 }
 0x158   :  { %v1136_v45 = vpop.eup %1135  ;;  %v382_v4 = vadd.f32 1e-05, %v366_v60  ;;  %v351_v27 = vadd.f32 %v327_v16, %v263_v35 }
 0x159   :  { %v427_v26 = vmul.f32 %v1136_v45, %v1515_v24  ;;  %v411_v44 = vmul.f32 %v1136_v45, %v1512_v63 }
 0x15a   :  { %1141 = vrsqrt.f32 %v382_v4  ;;  %v367_v6 = vmul.f32 0.0078125, %v351_v27 }
 0x15b   :  { %v330_v20 = vpop.xlane.xlu1 %329  ;;  %1016 = vmatmul.mubr.msk.f32.gmra.mrb[6].mxu1 %vm51_vm0, %v427_v26  ;;  %1056 = vmatmul.mubr.msk.f32.gmra.mrb[6].mxu0 %vm51_vm0, %v411_v44  ;;  %v266_v47 = vpop.xlane.xlu0 %265 }
 0x15c   :  { %v1138_v13 = vpop.eup %1137  ;;  %v383_v29 = vadd.f32 1e-05, %v367_v6  ;;  %v352_v28 = vadd.f32 %v330_v20, %v266_v47 }
 0x15d   :  { %v428_v7 = vmul.f32 %v1138_v13, %v1539_v17  ;;  %v412_v23 = vmul.f32 %v1138_v13, %v1536_v34 }
 0x15e   :  { %1143 = vrsqrt.f32 %v383_v29  ;;  %v368_v22 = vmul.f32 0.0078125, %v352_v28 }
 0x15f   :  { %v333_v24 = vpop.xlane.xlu1 %332  ;;  %1018 = vmatprep.mubr.msk.f32.mxu1 %vm51_vm0, %v428_v7  ;;  %1058 = vmatprep.mubr.msk.f32.mxu0 %vm51_vm0, %v412_v23  ;;  %v269_v63 = vpop.xlane.xlu0 %268 }
 0x160   :  { %v1140_v10 = vpop.eup %1139  ;;  %v384_v14 = vadd.f32 1e-05, %v368_v22  ;;  %v353_v49 = vadd.f32 %v333_v24, %v269_v63 }
 0x161   :  { %v429_v30 = vmul.f32 %v1140_v10, %v1563_v8  ;;  %v413_v31 = vmul.f32 %v1140_v10, %v1560_v58 }
 0x162   :  { %1145 = vrsqrt.f32 %v384_v14  ;;  %v369_v38 = vmul.f32 0.0078125, %v353_v49 }
 0x163   :  { %v336_v17 = vpop.xlane.xlu1 %335  ;;  %1019 = vmatmul.mubr.msk.f32.gmra.mrb[8].mxu1 %vm51_vm0, %v429_v30  ;;  %1059 = vmatmul.mubr.msk.f32.gmra.mrb[8].mxu0 %vm51_vm0, %v413_v31  ;;  %v272_v34 = vpop.xlane.xlu0 %271 }
 0x164   :  { %v1142_v46 = vpop.eup %1141  ;;  %v385_v43 = vadd.f32 1e-05, %v369_v38  ;;  %v354_v0 = vadd.f32 %v336_v17, %v272_v34 }
 0x165   :  { %v430_v40 = vmul.f32 %v1142_v46, %v1587_v19  ;;  %v414_v41 = vmul.f32 %v1142_v46, %v1584_v18 }
 0x166   :  { %1147 = vrsqrt.f32 %v385_v43  ;;  %v370_v2 = vmul.f32 0.0078125, %v354_v0 }
 0x167   :  { %v339_v8 = vpop.xlane.xlu1 %338  ;;  %1021 = vmatprep.mubr.msk.f32.mxu1 %vm51_vm0, %v430_v40  ;;  %1061 = vmatprep.mubr.msk.f32.mxu0 %vm51_vm0, %v414_v41  ;;  %v275_v58 = vpop.xlane.xlu0 %274 }
 0x168   :  { %v1144_v53 = vpop.eup %1143  ;;  %v386_v32 = vadd.f32 1e-05, %v370_v2  ;;  %v355_v9 = vadd.f32 %v339_v8, %v275_v58 }
 0x169   :  { %v431_v59 = vmul.f32 %v1144_v53, %v1611_v51  ;;  %v415_v33 = vmul.f32 %v1144_v53, %v1608_v50 }
 0x16a   :  { %1149 = vrsqrt.f32 %v386_v32  ;;  %v371_v1 = vmul.f32 0.0078125, %v355_v9 }
 0x16b   :  { %1022 = vmatmul.mubr.msk.f32.gmra.mrb[10].mxu1 %vm51_vm0, %v431_v59  ;;  %1062 = vmatmul.mubr.msk.f32.gmra.mrb[10].mxu0 %vm51_vm0, %v415_v33 }
 0x16c   :  { %v1146_v18 = vpop.eup %1145  ;;  %v387_v19 = vadd.f32 1e-05, %v371_v1 }
 0x16d   :  { %v432_v42 = vmul.f32 %v1146_v18, %v1623_v37  ;;  %v416_v5 = vmul.f32 %v1146_v18, %v1620_v36 }
 0x16e   :  { %1151 = vrsqrt.f32 %v387_v19 }
 0x16f   :  { %1024 = vmatprep.mubr.msk.f32.mxu1 %vm51_vm0, %v432_v42  ;;  %1064 = vmatprep.mubr.msk.f32.mxu0 %vm51_vm0, %v416_v5 }
 0x170   :  { %v1148_v51 = vpop.eup %1147 }
 0x171   :  { %v433_v50 = vmul.f32 %v1148_v51, %v1635_v48  ;;  %v417_v21 = vmul.f32 %v1148_v51, %v1632_v15 }
 0x173   :  { %1025 = vmatmul.mubr.msk.f32.gmra.mrb[12].mxu1 %vm51_vm0, %v433_v50  ;;  %1065 = vmatmul.mubr.msk.f32.gmra.mrb[12].mxu0 %vm51_vm0, %v417_v21 }
 0x174   :  { %v1150_v54 = vpop.eup %1149 }
 0x175   :  { %v434_v11 = vmul.f32 %v1150_v54, %v1647_v52  ;;  %v418_v37 = vmul.f32 %v1150_v54, %v1644_v39  ;;  %v1736_v52 = vld [vmem:[%s1785_s3] ss:$0 sm:$0xff]  ;;  %s1177_s3 = smov [#allocation2]  }
 0x176   :  { %s882_s5 = sshll.u32 %s1177_s3, 4  ;;  %s883_s5 = int_to_ptr.vmem [resolvable:$true] %s882_s5 }
 0x177   :  { %1027 = vmatprep.mubr.msk.f32.mxu1 %vm51_vm0, %v434_v11  ;;  %1067 = vmatprep.mubr.msk.f32.mxu0 %vm51_vm0, %v418_v37  ;;  %s1153_s6 = scalar_lea.vmem %s883_s5, 2048  ;;  %p1158_p1 = scmp.lt.s32.totalorder %s883_s5, %s883_s5 }
 0x178   :  { %v1152_v36 = vpop.eup %1151  ;;  %p1154_p0 = scmp.ne.s32.totalorder %s883_s5, %s1153_s6  ;;  %p1159_p2 = scmp.lt.s32.totalorder %s1153_s6, %s1153_s6 }
 0x179   :  { %v435_v12 = vmul.f32 %v1152_v36, %v1659_v56  ;;  %v419_v48 = vmul.f32 %v1152_v36, %v1656_v57 }
 0x17a   :  { %p1160_p3 = por %p1159_p2, %p1158_p1 }
 0x17b   :  { %1028 = vmatmul.mubr.msk.f32.gmra.mrb[14].mxu1 %vm51_vm0, %v435_v12  ;;  %1068 = vmatmul.mubr.msk.f32.gmra.mrb[14].mxu0 %vm51_vm0, %v419_v48 }
 0x17c   :  { %p1161_p4 = pnand %p1160_p3, %p1154_p0 }
 0x216   :  { %v1008_v15 = vpop.f32.mrb[0].mxu1  ;;  %v1048_v55 = vpop.f32.mrb[0].mxu0 }
 0x217   :  { %v765_v39 = vadd.f32 %v1048_v55, %v1008_v15  ;;  %v566_v62 = vpop.f32.mrb[1].mxu1  ;;  %v759_v25 = vpop.f32.mrb[1].mxu0 }
 0x218   :  { %v760_v61 = vadd.f32 %v759_v25, %v566_v62 }
 0x219   :  { %v846_v3 = vadd.f32 %v1736_v52, %v765_v39 }
 0x21a   :  { %v845_v56 = vadd.f32 %v1736_v52, %v760_v61 }
 0x21b   :  { %862 = vst.msk [vmem:[#allocation2 + $0x8] sm:$0xff] %vm51_vm0, %v846_v3 }
 0x21c   :  { %861 = vst.msk [vmem:[#allocation2] sm:$0xff] %vm51_vm0, %v845_v56 }
 0x21e   :  { %v1011_v57 = vpop.f32.mrb[2].mxu1  ;;  %v1051_v60 = vpop.f32.mrb[2].mxu0 }
 0x21f   :  { %v775_v16 = vadd.f32 %v1051_v60, %v1011_v57  ;;  %v576_v35 = vpop.f32.mrb[3].mxu1  ;;  %v769_v45 = vpop.f32.mrb[3].mxu0 }
 0x220   :  { %v770_v4 = vadd.f32 %v769_v45, %v576_v35 }
 0x221   :  { %v848_v27 = vadd.f32 %v1736_v52, %v775_v16 }
 0x222   :  { %v847_v26 = vadd.f32 %v1736_v52, %v770_v4 }
 0x223   :  { %864 = vst.msk [vmem:[#allocation2 + $0x18] sm:$0xff] %vm51_vm0, %v848_v27 }
 0x224   :  { %863 = vst.msk [vmem:[#allocation2 + $0x10] sm:$0xff] %vm51_vm0, %v847_v26 }
 0x226   :  { %v1014_v44 = vpop.f32.mrb[4].mxu1  ;;  %v1054_v6 = vpop.f32.mrb[4].mxu0 }
 0x227   :  { %v785_v20 = vadd.f32 %v1054_v6, %v1014_v44  ;;  %v586_v47 = vpop.f32.mrb[5].mxu1  ;;  %v779_v13 = vpop.f32.mrb[5].mxu0 }
 0x228   :  { %v780_v29 = vadd.f32 %v779_v13, %v586_v47 }
 0x229   :  { %v850_v28 = vadd.f32 %v1736_v52, %v785_v20 }
 0x22a   :  { %v849_v7 = vadd.f32 %v1736_v52, %v780_v29 }
 0x22b   :  { %866 = vst.msk [vmem:[#allocation2 + $0x28] sm:$0xff] %vm51_vm0, %v850_v28 }
 0x22c   :  { %865 = vst.msk [vmem:[#allocation2 + $0x20] sm:$0xff] %vm51_vm0, %v849_v7 }
 0x22e   :  { %v1017_v23 = vpop.f32.mrb[6].mxu1  ;;  %v1057_v22 = vpop.f32.mrb[6].mxu0 }
 0x22f   :  { %v795_v24 = vadd.f32 %v1057_v22, %v1017_v23  ;;  %v596_v63 = vpop.f32.mrb[7].mxu1  ;;  %v789_v10 = vpop.f32.mrb[7].mxu0 }
 0x230   :  { %v790_v14 = vadd.f32 %v789_v10, %v596_v63 }
 0x231   :  { %v852_v49 = vadd.f32 %v1736_v52, %v795_v24 }
 0x232   :  { %v851_v30 = vadd.f32 %v1736_v52, %v790_v14 }
 0x233   :  { %868 = vst.msk [vmem:[#allocation2 + $0x38] sm:$0xff] %vm51_vm0, %v852_v49 }
 0x234   :  { %867 = vst.msk [vmem:[#allocation2 + $0x30] sm:$0xff] %vm51_vm0, %v851_v30 }
 0x236   :  { %v1020_v31 = vpop.f32.mrb[8].mxu1  ;;  %v1060_v38 = vpop.f32.mrb[8].mxu0 }
 0x237   :  { %v805_v17 = vadd.f32 %v1060_v38, %v1020_v31  ;;  %v606_v34 = vpop.f32.mrb[9].mxu1  ;;  %v799_v46 = vpop.f32.mrb[9].mxu0 }
 0x238   :  { %v800_v43 = vadd.f32 %v799_v46, %v606_v34 }
 0x239   :  { %v854_v0 = vadd.f32 %v1736_v52, %v805_v17 }
 0x23a   :  { %v853_v40 = vadd.f32 %v1736_v52, %v800_v43 }
 0x23b   :  { %870 = vst.msk [vmem:[#allocation2 + $0x48] sm:$0xff] %vm51_vm0, %v854_v0 }
 0x23c   :  { %869 = vst.msk [vmem:[#allocation2 + $0x40] sm:$0xff] %vm51_vm0, %v853_v40 }
 0x23e   :  { %v1023_v41 = vpop.f32.mrb[10].mxu1  ;;  %v1063_v2 = vpop.f32.mrb[10].mxu0 }
 0x23f   :  { %v815_v8 = vadd.f32 %v1063_v2, %v1023_v41  ;;  %v616_v58 = vpop.f32.mrb[11].mxu1  ;;  %v809_v53 = vpop.f32.mrb[11].mxu0 }
 0x240   :  { %v810_v32 = vadd.f32 %v809_v53, %v616_v58 }
 0x241   :  { %v856_v9 = vadd.f32 %v1736_v52, %v815_v8 }
 0x242   :  { %v855_v59 = vadd.f32 %v1736_v52, %v810_v32 }
 0x243   :  { %872 = vst.msk [vmem:[#allocation2 + $0x58] sm:$0xff] %vm51_vm0, %v856_v9 }
 0x244   :  { %871 = vst.msk [vmem:[#allocation2 + $0x50] sm:$0xff] %vm51_vm0, %v855_v59 }
 0x246   :  { %v1026_v33 = vpop.f32.mrb[12].mxu1  ;;  %v1066_v1 = vpop.f32.mrb[12].mxu0 }
 0x247   :  { %v825_v18 = vadd.f32 %v1066_v1, %v1026_v33  ;;  %v626_v19 = vpop.f32.mrb[13].mxu1  ;;  %v819_v42 = vpop.f32.mrb[13].mxu0 }
 0x248   :  { %v820_v5 = vadd.f32 %v819_v42, %v626_v19 }
 0x249   :  { %v858_v51 = vadd.f32 %v1736_v52, %v825_v18 }
 0x24a   :  { %v857_v50 = vadd.f32 %v1736_v52, %v820_v5 }
 0x24b   :  { %874 = vst.msk [vmem:[#allocation2 + $0x68] sm:$0xff] %vm51_vm0, %v858_v51 }
 0x24c   :  { %873 = vst.msk [vmem:[#allocation2 + $0x60] sm:$0xff] %vm51_vm0, %v857_v50 }
 0x24e   :  { %v1029_v21 = vpop.f32.mrb[14].mxu1  ;;  %v1069_v54 = vpop.f32.mrb[14].mxu0 }
 0x24f   :  { %v835_v11 = vadd.f32 %v1069_v54, %v1029_v21  ;;  %v636_v37 = vpop.f32.mrb[15].mxu1  ;;  %v829_v36 = vpop.f32.mrb[15].mxu0 }
 0x250   :  { %v830_v12 = vadd.f32 %v829_v36, %v636_v37 }
 0x251   :  { %v860_v48 = vadd.f32 %v1736_v52, %v835_v11 }
 0x252   :  { %v859_v15 = vadd.f32 %v1736_v52, %v830_v12 }
 0x253   :  { %876 = vst.msk [vmem:[#allocation2 + $0x78] sm:$0xff] %vm51_vm0, %v860_v48 }
 0x254   :  { %875 = vst.msk [vmem:[#allocation2 + $0x70] sm:$0xff] %vm51_vm0, %v859_v15 }
 0x255   :  { %1164 = shalt.err (!%p1161_p4)
}
 0x256   :  { %s1165_s9 = scalar_lea.hbm %s1786_s4, 2048 }
 0x257   :  { %p1166_p5 = scmp.ne.s32.totalorder %s1786_s4, %s1165_s9  ;;  %p1169_p6 = scmp.lt.u32.totalorder %s1165_s9, %s1786_s4 }
 0x259   :  { %p1171_p7 = pnand %p1169_p6, %p1166_p5 }
 0x25b   :  { %1174 = shalt.err (!%p1171_p7)
}
 0x25c   :  { %s1178_s14 = smov 128   ;;  %s1179_s15 = smov 8  }
 0x25d   :  { %888 = dma.vmem_to_hbm [thread:$0]  %s883_s5, 2048, %s1786_s4, [#allocation3], %s1178_s14, %s1178_s14, %s1179_s15  }
 0x25e   :  { %1175 = dma.done.wait [#allocation3], 2048  }
 0x25f   :  { %1176 = vsyncadd [#allocation3], 4294965248 }
 0x260   :  { %892 = vsyncpa [#allocation3], 1 }

</bundles_post_ra>
